<compile_context>
chip_gen: v6e
topology: v6e:2x2x1
jax: 0.10.0
libtpu: 0.0.40
codegen_flags: <defaults>
</compile_context>

<pallas_src>
import jax
import jax.numpy as jnp
from jax import lax
from jax.experimental import pallas as pl
from jax.experimental.pallas import tpu as pltpu


def _round_up(a, m):
    return (a + m - 1) // m * m


def _make_rcf_kernel(H, W, C, k, Ho, Wo, rows_per_split, two_p, inv_l):
    def kernel(x_ref, w_ref, b_ref, out_ref):
        # x_ref  : (H, W, C)     bf16  channels-last image for batch b (resident)
        # w_ref  : (C*k*k, 2P)   bf16  folded im2col weights, row order (i, j, c)
        # b_ref  : (1, 2P)       f32   folded biases [b, -b]
        # out_ref: (1, 2P)       f32   partial pooled features for (batch, split)
        split = pl.program_id(1)
        row0 = split * rows_per_split

        w_mat = w_ref[...]                      # hoisted out of the row loop
        b2 = b_ref[...]                         # (1, 2P) f32

        def body(t, acc):
            row = row0 + t
            valid = row < Ho                    # ragged tail of the last split
            row_c = jnp.minimum(row, Ho - 1)    # clamp -> loads stay in bounds

            # im2col slab for this output row: (Wo, C*k*k), K on lanes.
            chunks = []
            for i in range(k):                          # static
                plane = x_ref[row_c + i]                # (W, C) bf16
                for j in range(k):                      # static
                    chunks.append(plane[j:j + Wo, :])   # (Wo, C)
            slab = jnp.concatenate(chunks, axis=1)      # (Wo, C*k*k)

            # Single MXU pass, f32 accumulation, 2P (features) on lanes.
            conv = jnp.dot(slab, w_mat, preferred_element_type=jnp.float32)
            conv = conv + b2                            # (Wo, 2P)
            row_sum = jnp.maximum(conv, 0.0).sum(axis=0, keepdims=True)  # (1, 2P)
            return acc + jnp.where(valid, row_sum, 0.0)

        acc0 = jnp.zeros((1, two_p), jnp.float32)
        acc = lax.fori_loop(0, rows_per_split, body, acc0)
        out_ref[...] = acc * inv_l              # lane-dense (1, 2P) store

    return kernel


def rcf_forward(x, weights, biases, *, row_splits=1, compute_dtype=jnp.bfloat16):
    """RCF forward. x: (B, C, H, W) f32; weights: (P, C, k, k); biases: (P,).

    Returns (B, 2*P) features laid out [relu(+conv) means | relu(-conv) means],
    matching the PyTorch module's torch.cat(dim=1) output (for B >= 2).
    `row_splits` > 1 adds a second 'parallel' grid axis (per-split partial sums
    combined in the wrapper) to feed v7x's second TensorCore when B is small.
    """
    B, C, H, W = x.shape
    P, Cw, kh, kw = weights.shape
    assert C == Cw and kh == kw
    k = kh
    Ho, Wo = H - k + 1, W - k + 1
    two_p = 2 * P
    K = C * k * k

    row_splits = max(1, min(int(row_splits), Ho))
    rows_per_split = (Ho + row_splits - 1) // row_splits
    inv_l = 1.0 / float(Ho * Wo)

    # bf16, channels-last: every im2col chunk is a plain (Wo, C) slice.
    x_hwc = jnp.transpose(x, (0, 2, 3, 1)).astype(compute_dtype)       # (B, H, W, C)

    # Fold +/- branches:  -conv(x, W, b) == conv(x, -W) + (-b).
    w2 = jnp.concatenate([weights, -weights], axis=0)                  # (2P, C, k, k)
    # (C*k*k, 2P) with row order (i, j, c) matching the in-kernel concat order.
    w_mat = jnp.transpose(w2, (2, 3, 1, 0)).reshape(K, two_p).astype(compute_dtype)
    b2 = jnp.concatenate([biases, -biases]).reshape(1, two_p).astype(jnp.float32)

    kernel = _make_rcf_kernel(H, W, C, k, Ho, Wo, rows_per_split, two_p, inv_l)

    # VMEM budget from actual (sublane, lane)-padded block sizes, double-buffered.
    bpe = jnp.dtype(compute_dtype).itemsize
    sub = 16 if bpe == 2 else 8
    x_blk = H * _round_up(W, sub) * _round_up(C, 128) * bpe
    w_blk = _round_up(K, sub) * _round_up(two_p, 128) * bpe
    b_blk = 8 * _round_up(two_p, 128) * 4
    o_blk = 8 * _round_up(two_p, 128) * 4
    needed = 2 * (x_blk + w_blk + b_blk + o_blk) + (2 << 20)
    vmem_limit = int(min(max(needed, 16 << 20), 48 << 20))   # <= ~48 MiB: v7x-safe

    flops = 2.0 * B * Ho * Wo * K * two_p
    bytes_accessed = (x_hwc.size * bpe + w_mat.size * bpe + b2.size * 4
                      + B * row_splits * two_p * 4)

    out = pl.pallas_call(
        kernel,
        out_shape=jax.ShapeDtypeStruct((B, row_splits, 1, two_p), jnp.float32),
        grid_spec=pltpu.PrefetchScalarGridSpec(
            num_scalar_prefetch=0,
            grid=(B, row_splits),
            in_specs=[
                # whole image of batch b, resident across the split axis
                pl.BlockSpec((None, H, W, C), lambda b, s: (b, 0, 0, 0)),
                pl.BlockSpec((K, two_p), lambda b, s: (0, 0)),
                pl.BlockSpec((1, two_p), lambda b, s: (0, 0)),
            ],
            out_specs=pl.BlockSpec((None, None, 1, two_p), lambda b, s: (b, s, 0, 0)),
        ),
        compiler_params=pltpu.CompilerParams(
            dimension_semantics=("parallel", "parallel"),
            vmem_limit_bytes=vmem_limit,
        ),
        cost_estimate=pl.CostEstimate(
            flops=int(flops), transcendentals=0, bytes_accessed=int(bytes_accessed)),
    )(x_hwc, w_mat, b2)

    # Per-split partial sums (already 1/L-scaled) -> total means.
    return out.reshape(B, row_splits, two_p).sum(axis=1)


def rcf_reference(x, weights, biases):
    """Pure-JAX reference mirroring the PyTorch forward (for correctness check)."""
    conv = jax.lax.conv_general_dilated(
        x, weights, window_strides=(1, 1), padding='VALID',
        dimension_numbers=('NCHW', 'OIHW', 'NCHW'))
    conv = conv + biases[None, :, None, None]
    x1a = jnp.maximum(conv, 0.0).mean(axis=(2, 3))
    x1b = jnp.maximum(-conv, 0.0).mean(axis=(2, 3))
    return jnp.concatenate([x1a, x1b], axis=1)


if __name__ == "__main__":
    # Module defaults: in_channels=4, features=16 -> num_patches=8, kernel_size=3,
    # bias=-1.0, mode="gaussian" (weights ~ N(0, 1), fixed / non-trainable).
    B, C, H, W = 2, 4, 16, 16
    features, k = 16, 3
    P = features // 2

    key = jax.random.PRNGKey(0)
    kx, kw = jax.random.split(key)
    x = jax.random.normal(kx, (B, C, H, W), dtype=jnp.float32)
    weights = jax.random.normal(kw, (P, C, k, k), dtype=jnp.float32)   # gaussian mode
    biases = jnp.full((P,), -1.0, dtype=jnp.float32)
    # TODO(synk): "empirical" mode (ZCA-whitened dataset patches) is host-side numpy
    # init, not a kernel concern; only gaussian init is reproduced here.
    # TODO(synk): the B==1 squeeze()/cat(dim=0) path of the module is trivial
    # host-side reshaping and is not exercised here (demo uses B=2).

    out = jax.block_until_ready(rcf_forward(x, weights, biases))
    assert out.shape == (B, 2 * P), out.shape

    # Tight check vs a reference fed the same bf16-rounded matmul inputs
    # (isolates accumulation-order differences only).
    xq = x.astype(jnp.bfloat16).astype(jnp.float32)
    wq = weights.astype(jnp.bfloat16).astype(jnp.float32)
    ref_q = rcf_reference(xq, wq, biases)
    assert jnp.allclose(out, ref_q, atol=1e-3, rtol=1e-3), (
        f"max abs err vs bf16-rounded ref {float(jnp.max(jnp.abs(out - ref_q)))}")

    # Looser check vs the exact f32 module output (bf16 input rounding tolerance).
    ref = rcf_reference(x, weights, biases)
    assert jnp.allclose(out, ref, atol=5e-2, rtol=5e-2), (
        f"max abs err vs f32 ref {float(jnp.max(jnp.abs(out - ref)))}")

    # Exercise the split-rows path (second parallel axis for v7x's 2 TensorCores).
    out2 = jax.block_until_ready(rcf_forward(x, weights, biases, row_splits=2))
    assert jnp.allclose(out2, ref_q, atol=1e-3, rtol=1e-3), (
        f"max abs err (row_splits=2) {float(jnp.max(jnp.abs(out2 - ref_q)))}")

    print("KERNEL_OK")
</pallas_src>

<mosaic_0001>
module attributes {stable_mosaic.version = 11 : i64} {
  func.func @kernel(%arg0: i32, %arg1: i32, %arg2: memref<1x16x16x4xbf16, #tpu.memory_space<vmem>>, %arg3: memref<36x16xbf16, #tpu.memory_space<vmem>>, %arg4: memref<1x16xf32, #tpu.memory_space<vmem>>, %arg5: memref<1x1x1x16xf32, #tpu.memory_space<vmem>>) attributes {dimension_semantics = [#tpu.dimension_semantics<parallel>, #tpu.dimension_semantics<parallel>], iteration_bounds = array<i64: 2, 1>, scalar_prefetch = 0 : i64, scratch_operands = 0 : i64, tpu.core_type = #tpu.core_type<tc>, window_params = [{transform_indices = @transform_0, window_bounds = array<i64: 1, 16, 16, 4>}, {pipeline_mode = #tpu.pipeline_mode<synchronous>, transform_indices = @transform_1, window_bounds = array<i64: 36, 16>}, {pipeline_mode = #tpu.pipeline_mode<synchronous>, transform_indices = @transform_2, window_bounds = array<i64: 1, 16>}, {transform_indices = @transform_3, window_bounds = array<i64: 1, 1, 1, 16>}]} {
    %c14_i32 = arith.constant 14 : i32
    %0 = arith.muli %arg1, %c14_i32 : i32
    %c0 = arith.constant 0 : index
    %c0_0 = arith.constant 0 : index
    %1 = vector.load %arg3[%c0, %c0_0] : memref<36x16xbf16, #tpu.memory_space<vmem>>, vector<36x16xbf16>
    %c0_1 = arith.constant 0 : index
    %c0_2 = arith.constant 0 : index
    %2 = vector.load %arg4[%c0_1, %c0_2] : memref<1x16xf32, #tpu.memory_space<vmem>>, vector<1x16xf32>
    %cst = arith.constant 0.000000e+00 : f32
    %3 = vector.broadcast %cst : f32 to vector<1x16xf32>
    %c0_i32 = arith.constant 0 : i32
    %c14_i32_3 = arith.constant 14 : i32
    %4 = arith.addi %c0_i32, %c14_i32_3 : i32
    %c1_i32 = arith.constant 1 : i32
    %5 = scf.for %arg6 = %c0_i32 to %4 step %c1_i32 iter_args(%arg7 = %3) -> (vector<1x16xf32>)  : i32 {
      %11 = arith.addi %0, %arg6 : i32
      %c14_i32_10 = arith.constant 14 : i32
      %12 = arith.cmpi slt, %11, %c14_i32_10 : i32
      %c13_i32 = arith.constant 13 : i32
      %13 = arith.minsi %11, %c13_i32 : i32
      %c0_i32_11 = arith.constant 0 : i32
      %14 = arith.addi %13, %c0_i32_11 : i32
      %c0_12 = arith.constant 0 : index
      %15 = arith.index_cast %14 : i32 to index
      %c0_13 = arith.constant 0 : index
      %c0_14 = arith.constant 0 : index
      %16 = vector.load %arg2[%c0_12, %15, %c0_13, %c0_14] : memref<1x16x16x4xbf16, #tpu.memory_space<vmem>>, vector<1x1x16x4xbf16>
      %17 = vector.shape_cast %16 : vector<1x1x16x4xbf16> to vector<16x4xbf16>
      %18 = vector.extract_strided_slice %17 {offsets = [0, 0], sizes = [14, 4], strides = [1, 1]} : vector<16x4xbf16> to vector<14x4xbf16>
      %19 = vector.extract_strided_slice %17 {offsets = [1, 0], sizes = [14, 4], strides = [1, 1]} : vector<16x4xbf16> to vector<14x4xbf16>
      %20 = vector.extract_strided_slice %17 {offsets = [2, 0], sizes = [14, 4], strides = [1, 1]} : vector<16x4xbf16> to vector<14x4xbf16>
      %c1_i32_15 = arith.constant 1 : i32
      %21 = arith.addi %13, %c1_i32_15 : i32
      %c0_16 = arith.constant 0 : index
      %22 = arith.index_cast %21 : i32 to index
      %c0_17 = arith.constant 0 : index
      %c0_18 = arith.constant 0 : index
      %23 = vector.load %arg2[%c0_16, %22, %c0_17, %c0_18] : memref<1x16x16x4xbf16, #tpu.memory_space<vmem>>, vector<1x1x16x4xbf16>
      %24 = vector.shape_cast %23 : vector<1x1x16x4xbf16> to vector<16x4xbf16>
      %25 = vector.extract_strided_slice %24 {offsets = [0, 0], sizes = [14, 4], strides = [1, 1]} : vector<16x4xbf16> to vector<14x4xbf16>
      %26 = vector.extract_strided_slice %24 {offsets = [1, 0], sizes = [14, 4], strides = [1, 1]} : vector<16x4xbf16> to vector<14x4xbf16>
      %27 = vector.extract_strided_slice %24 {offsets = [2, 0], sizes = [14, 4], strides = [1, 1]} : vector<16x4xbf16> to vector<14x4xbf16>
      %c2_i32 = arith.constant 2 : i32
      %28 = arith.addi %13, %c2_i32 : i32
      %c0_19 = arith.constant 0 : index
      %29 = arith.index_cast %28 : i32 to index
      %c0_20 = arith.constant 0 : index
      %c0_21 = arith.constant 0 : index
      %30 = vector.load %arg2[%c0_19, %29, %c0_20, %c0_21] : memref<1x16x16x4xbf16, #tpu.memory_space<vmem>>, vector<1x1x16x4xbf16>
      %31 = vector.shape_cast %30 : vector<1x1x16x4xbf16> to vector<16x4xbf16>
      %32 = vector.extract_strided_slice %31 {offsets = [0, 0], sizes = [14, 4], strides = [1, 1]} : vector<16x4xbf16> to vector<14x4xbf16>
      %33 = vector.extract_strided_slice %31 {offsets = [1, 0], sizes = [14, 4], strides = [1, 1]} : vector<16x4xbf16> to vector<14x4xbf16>
      %34 = vector.extract_strided_slice %31 {offsets = [2, 0], sizes = [14, 4], strides = [1, 1]} : vector<16x4xbf16> to vector<14x4xbf16>
      %35 = tpu.concatenate %18, %19, %20, %25, %26, %27, %32, %33, %34 in 1 : vector<14x4xbf16>, vector<14x4xbf16>, vector<14x4xbf16>, vector<14x4xbf16>, vector<14x4xbf16>, vector<14x4xbf16>, vector<14x4xbf16>, vector<14x4xbf16>, vector<14x4xbf16> -> vector<14x36xbf16>
      %cst_22 = arith.constant dense<0.000000e+00> : vector<14x16xf32>
      %36 = tpu.matmul %35, %1, %cst_22 {dimension_numbers = #tpu.dot_dimension_numbers<[1], [0], [0], [1], [0, 0, 1, 1], [], []>} : vector<14x36xbf16>, vector<36x16xbf16>, vector<14x16xf32> -> vector<14x16xf32>
      %37 = vector.broadcast %2 : vector<1x16xf32> to vector<14x16xf32>
      %38 = arith.addf %36, %37 : vector<14x16xf32>
      %cst_23 = arith.constant 0.000000e+00 : f32
      %39 = vector.broadcast %cst_23 : f32 to vector<14x16xf32>
      %40 = arith.maximumf %38, %39 : vector<14x16xf32>
      %cst_24 = arith.constant dense<0.000000e+00> : vector<16xf32>
      %41 = vector.multi_reduction <add>, %40, %cst_24 [0] : vector<14x16xf32> to vector<16xf32>
      %42 = vector.shape_cast %41 : vector<16xf32> to vector<1x16xf32>
      %cst_25 = arith.constant 0.000000e+00 : f32
      %43 = vector.broadcast %cst_25 : f32 to vector<1x16xf32>
      %44 = arith.select %12, %42, %43 : vector<1x16xf32>
      %45 = arith.addf %arg7, %44 : vector<1x16xf32>
      scf.yield %45 : vector<1x16xf32>
    }
    %c14_i32_4 = arith.constant 14 : i32
    %cst_5 = arith.constant 0.00510204071 : f32
    %6 = vector.broadcast %cst_5 : f32 to vector<1x16xf32>
    %7 = arith.mulf %5, %6 : vector<1x16xf32>
    %c0_6 = arith.constant 0 : index
    %c0_7 = arith.constant 0 : index
    %c0_8 = arith.constant 0 : index
    %c0_9 = arith.constant 0 : index
    %8 = vector.load %arg5[%c0_6, %c0_7, %c0_8, %c0_9] : memref<1x1x1x16xf32, #tpu.memory_space<vmem>>, vector<1x1x1x16xf32>
    %9 = vector.shape_cast %8 : vector<1x1x1x16xf32> to vector<1x16xf32>
    %10 = vector.shape_cast %7 : vector<1x16xf32> to vector<1x1x1x16xf32>
    tpu.vector_store %arg5[%c0_6, %c0_7, %c0_8, %c0_9], %10 {strides = array<i32>} : memref<1x1x1x16xf32, #tpu.memory_space<vmem>>, vector<1x1x1x16xf32>,
    return
  }
  func.func @transform_0(%arg0: i32, %arg1: i32) -> (i32, i32, i32, i32) {
    %c0_i32 = arith.constant 0 : i32
    %c0_i32_0 = arith.constant 0 : i32
    %c0_i32_1 = arith.constant 0 : i32
    %c0_i32_2 = arith.constant 0 : i32
    return %arg0, %c0_i32, %c0_i32_0, %c0_i32_1 : i32, i32, i32, i32
  }
  func.func @transform_1(%arg0: i32, %arg1: i32) -> (i32, i32) {
    %c0_i32 = arith.constant 0 : i32
    %c0_i32_0 = arith.constant 0 : i32
    %c0_i32_1 = arith.constant 0 : i32
    return %c0_i32, %c0_i32_0 : i32, i32
  }
  func.func @transform_2(%arg0: i32, %arg1: i32) -> (i32, i32) {
    %c0_i32 = arith.constant 0 : i32
    %c0_i32_0 = arith.constant 0 : i32
    %c0_i32_1 = arith.constant 0 : i32
    return %c0_i32, %c0_i32_0 : i32, i32
  }
  func.func @transform_3(%arg0: i32, %arg1: i32) -> (i32, i32, i32, i32) {
    %c0_i32 = arith.constant 0 : i32
    %c0_i32_0 = arith.constant 0 : i32
    %c0_i32_1 = arith.constant 0 : i32
    return %arg0, %arg1, %c0_i32, %c0_i32_0 : i32, i32, i32, i32
  }
}

</mosaic_0001>

<bundles_post_ra>
// kernel: tpu_custom_call.1
= control target key start
LH: loop header
LB: loop body
LE: loop exit
PB: predicated region body
PF: predicated region fallthrough
CT: control target
= control target key end

     0   :  { %8 = vsyncpa [#allocation3], 0  ;;  %s906_s0 = inlined_call_operand.vmem [shape: bf16[2,16,16,4], index: 0, kind: input, shape index: {}]   ;;  %s907_s1 = inlined_call_operand.vmem [shape: bf16[36,16], index: 1, kind: input, shape index: {}]   ;;  %s908_s2 = inlined_call_operand.vmem [shape: f32[1,16], index: 2, kind: input, shape index: {}]   ;;  %s909_s3 = inlined_call_operand.hbm [shape: f32[2,1,1,16], index: 3, kind: output, shape index: {}]  }
   0x1   :  { %10 = vsyncpa [#allocation3 + $0x1], 0  ;;  %s731_s12 = smov 0   ;;  %s733_s13 = smov 0  }
   0x2   :  { %s735_s14 = smov 0   ;;  %s737_s15 = smov 0  }
   0x3   :  { %s739_s16 = smov 0   ;;  %s741_s17 = smov 0  }
   0x4 LB: > { %s480_s18 = sadd.s32 4294967295, %s690_s17   ;;  %s481_s19 = sadd.s32 4294967294, %s690_s17   ;;  %s690_s17 = sphi %s741_s17, %s16_s17   ;;  %s686_s16 = sphi %s739_s16, %s917_s16   ;;  %s682_s15 = sphi %s737_s15, %s916_s15   ;;  %s678_s14 = sphi %s735_s14, %s915_s14   ;;  %s674_s13 = sphi %s733_s13, %s914_s13   ;;  %s670_s12 = sphi %s731_s12, %s913_s12  }
   0x5   : > { %s28_s20 = sadd.s32 1, %s686_s16  ;;  %s105_s21 = sadd.s32 1, %s678_s14 }
   0x6   : > { %p30_p0 = scmp.ge.s32.totalorder %s28_s20, 2  ;;  %p115_p1 = scmp.ne.s32.totalorder %s678_s14, %s674_s13 }
   0x7   : > { %p116_p2 = scmp.eq.s32.totalorder %s480_s18, 1  ;;  %p121_p3 = scmp.ne.s32.totalorder %s674_s13, %s670_s12 }
   0x8   : > { %s919_s20 = smov (%p30_p0, %s28_s20), 0  ;;  %p122_p5 = scmp.eq.s32.totalorder %s481_s19, 1 }
   0x9   : > { %p771_p4 = por %p116_p2, %p115_p1  ;;  %s100_s23 = ssub.s32 %s686_s16, %s919_s20 }
   0xa   : > { %p484_p6 = scmp.ge.s32.totalorder %s690_s17, 1  ;;  %p103_p7 = scmp.eq.s32.totalorder %s100_s23, 0 }
   0xb   : > { %p778_p8 = por %p122_p5, %p121_p3  ;;  %p154_p9 = scmp.lt.s32.totalorder %s690_s17, 3 }
   0xc   : > { %s784_s25 = scalar_select %p103_p7, %s678_s14, %s105_s21  }
   0xd   : > { %p155_p10 = pnand %p484_p6, %p154_p9 }
   0xe   : > { %s175_s26 = sand.u32 (!%p155_p10), 1, %s674_s13   ;;  %p177_p11 = scmp.lt.s32.totalorder (!%p155_p10), %s682_s15, 1 }
   0xf   : > { %158 = sbr.rel (%p155_p10) target bundleno = 397 (0x18d), region = 32  ;;  %s826_s28 = scalar_lea.vmem (!%p155_p10), [#allocation2], %s175_s26 }
  0x10   : > { %s830_s29 = smov (!%p155_p10), 0  }
  0x14   : > { %v791_v0 = vld [vmem:[%s907_s1] sm:$0xf]  ;;  %v796_v1 = vld [vmem:[%s907_s1 + $0x4] sm:$0xf]  ;;  %v801_v2 = vld [vmem:[%s907_s1 + $0x8] sm:$0xf] }
  0x15   : > { %v806_v3 = vld [vmem:[%s907_s1 + $0xc] sm:$0xf]  ;;  %s178_s8 = scalar_select %p177_p11, %s682_s15, 1  ;;  %v812_v4 = vld [vmem:[%s907_s1 + $0x10] sm:$0x3]  ;;  %v828_v6 = vmov 0.0  }
  0x16   : > { %v817_v5 = vld [vmem:[%s908_s2] ss:$0 sm:$0xff] }
  0x17   : > { %s506_s19 = sshll.u32 %s178_s8, 7 }
  0x18   : > { %s822_s27 = scalar_lea.vmem %s906_s0, %s506_s19 }
  0x19 LB: >> { %v501_v7 = vcombine.low %v812_v4, %v812_v4  ;;  %vm321_vm0 = vcmask 1041408   ;;  %v700_v8 = vmov 0.0   ;;  %p199_p12 = scmp.lt.s32.totalorder %s698_s29, 13  ;;  %v500_v10 = vcombine.low %v801_v2, %v806_v3  ;;  %s701_s6 = smov 12   ;;  %s698_s29 = sphi %s830_s29, %s195_s29   ;;  %v694_v6 = vphi %v828_v6, %v912_v6  }
  0x1a   : >> { %512 = vmatprep.subr.bf16.mxu0 %v700_v8  ;;  %v499_v12 = vcombine.low %v791_v0, %v796_v1  ;;  %s702_s7 = smov 8   ;;  %s703_s8 = smov 24   ;;  %vm704_vm1 = vmmov 0   ;;  %vm273_vm2 = vcmask 31744   ;;  %vm276_vm3 = vcmask 64512  }
  0x1b   : >> { %v323_v9 = vsel %vm321_vm0, %v501_v7, 0  ;;  %s200_s30 = scalar_select %p199_p12, %s698_s29, 13  ;;  %518 = vmatprep.mubr.msk.bf16.mxu0 %vm704_vm1, %v700_v8  ;;  %vm279_vm4 = vcmask 97280   ;;  %vm282_vm5 = vcmask 130048   ;;  %vm285_vm6 = vcmask 162816  }
  0x1c   : >> { %513 = vmatpush3.bf16.msra.mxu0 %v323_v9  ;;  %s705_s9 = smov 4   ;;  %s706_s10 = smov 16   ;;  %vm288_vm7 = vcmask 195584   ;;  %vm291_vm8 = vcmask 228352   ;;  %vm294_vm9 = vcmask 261120   ;;  %vm318_vm10 = vcmask 293888  }
  0x1d   : >> { %514 = vmatprep.subr.bf16.mxu0 %v700_v8  ;;  %s507_s4 = sshll.u32 %s200_s30, 3  ;;  %s707_s11 = smov 20   ;;  %vm369_vm11 = vcmask 128000  }
  0x1e   : >> { %s203_s5 = scalar_lea.vmem %s822_s27, %s507_s4  ;;  %s708_s18 = smov 32  }
  0x1f   : >> { %v603_v11 = vld [vmem:[%s203_s5 + $0x8] sm:$0xff]   ;;  %v604_v13 = vld [vmem:[%s203_s5] sm:$0xff]   ;;  %v605_v14 = vld [vmem:[%s203_s5 + $0x10] sm:$0xff]   ;;  %s709_s19 = smov 28   ;;  %p198_p13 = scmp.lt.s32.totalorder %s698_s29, 14 }
  0x20   : >> { %515 = vmatpush3.bf16.msra.mxu0 %v500_v10  ;;  %240 = vrot.lane.b32.xlu1 %v603_v11, %s701_s6  ;;  %v243_v15 = vshrl.u32 %v603_v11, 16  ;;  %v232_v16 = vrot.slane %v604_v13, 1  ;;  %v224_v17 = vshrl.u32 %v604_v13, 16  ;;  %v226_v18 = vshll.u32 %v604_v13, 16  ;;  %s195_s29 = sadd.s32 1, %s698_s29  }
  0x21   : >> { %516 = vmatprep.subr.bf16.mxu0 %v700_v8  ;;  %v245_v19 = vshll.u32 %v603_v11, 16  ;;  %v264_v22 = vshll.u32 %v605_v14, 16  ;;  %v251_v25 = vrot.slane %v603_v11, 1  ;;  %v262_v26 = vshrl.u32 %v605_v14, 16  ;;  %s378_s21 = scalar_select %p198_p13, 1, 0 }
  0x22   : >> { %233 = vrot.lane.b32.xlu0 %v232_v16, %s702_s7  ;;  %v228_v20 = vrot.slane %v226_v18, 1  ;;  %v270_v28 = vrot.slane %v605_v14, 1  ;;  %p192_p0 = scmp.ge.s32.totalorder %s195_s29, 14  }
  0x23   : >> { %v247_v21 = vrot.slane %v245_v19, 1  ;;  %v266_v27 = vrot.slane %v264_v22, 1  ;;  %v379_v61 = vstv %s378_s21  ;;  %vm384_vm13 = vcmask (%p192_p0), 122880   ;;  %s503_s23 = sshll.u32 (%p192_p0), %s682_s15, 4  ;;  %s400_s6 = sshll.u32 (%p192_p0), %s826_s28, 4  ;;  %s401_s6 = int_to_ptr.vmem [resolvable:$true] %s400_s6 }
  0x24   : >> { %517 = vmatpush3.bf16.msra.mxu0 %v499_v12  ;;  %259 = vrot.lane.b32.xlu1 %v605_v14, %s703_s8  ;;  %v229_v23 = vor.u32 %v228_v20, %v224_v17  ;;  %vm380_vm12 = vcmp.eq.s32.totalorder %v379_v61, 1  ;;  %s862_s5 = scalar_lea.hbm (%p192_p0), %s909_s3, %s503_s23  ;;  %s387_s7 = scalar_lea.sflag (%p192_p0), [#allocation3], %s175_s26 }
  0x25   : >> { %v248_v24 = vor.u32 %v247_v21, %v243_v15  ;;  %v267_v29 = vor.u32 %v266_v27, %v262_v26  ;;  %s606_s29 = scalar_lea.vmem (%p192_p0), %s401_s6, 16  ;;  %s710_s27 = smov (%p192_p0), [#allocation2]  }
  0x26   : >> { %230 = vrot.lane.b32.xlu0 %v229_v23, %s705_s9  ;;  %p607_p1 = scmp.ne.s32.totalorder (%p192_p0), %s401_s6, %s606_s29  ;;  %s610_s8 = sshll.u32 (%p192_p0), %s710_s27, 4  ;;  %s611_s8 = int_to_ptr.vmem [resolvable:$false] %s610_s8 }
  0x27   : > { %s612_s9 = scalar_lea.vmem (%p192_p0), %s611_s8, 32  ;;  %p613_p5 = scmp.lt.s32.totalorder (%p192_p0), %s401_s6, %s611_s8 }
  0x28   : >> { %249 = vrot.lane.b32.xlu1 %v248_v24, %s706_s10  ;;  %p608_p2 = pnand (%p192_p0), %p607_p1, %p771_p4  ;;  %p614_p6 = scmp.lt.s32.totalorder (%p192_p0), %s612_s9, %s606_s29 }
  0x2a   : >> { %252 = vrot.lane.b32.xlu0 %v251_v25, %s707_s11  ;;  %p609_p3 = pneg (%p192_p0), %p608_p2  ;;  %p615_p7 = por (%p192_p0), %p614_p6, %p613_p5 }
  0x2c   : >> { %271 = vrot.lane.b32.xlu1 %v270_v28, %s708_s18  ;;  %p616_p9 = pnand (%p192_p0), %p615_p7, %p609_p3 }
  0x2e   : >> { %268 = vrot.lane.b32.xlu0 %v267_v29, %s709_s19 }
  0x92   : >> { %v241_v30 = vpop.permute.xlu1 %240 }
  0x94   : >> { %v234_v31 = vpop.permute.xlu0 %233 }
  0x96   : >> { %v260_v32 = vpop.permute.xlu1 %259 }
  0x98   : >> { %v231_v33 = vpop.permute.xlu0 %230 }
  0x99   : >> { %v275_v34 = vsel %vm273_vm2, %v604_v13, %v231_v33 }
  0x9a   : >> { %v250_v35 = vpop.permute.xlu1 %249  ;;  %v278_v36 = vsel %vm276_vm3, %v275_v34, %v234_v31 }
  0x9b   : >> { %v281_v37 = vsel %vm279_vm4, %v278_v36, %v241_v30 }
  0x9c   : >> { %v284_v38 = vsel %vm282_vm5, %v281_v37, %v250_v35  ;;  %v253_v39 = vpop.permute.xlu0 %252 }
  0x9d   : >> { %v287_v40 = vsel %vm285_vm6, %v284_v38, %v253_v39 }
  0x9e   : >> { %v272_v41 = vpop.permute.xlu1 %271  ;;  %v290_v42 = vsel %vm288_vm7, %v287_v40, %v260_v32 }
  0xa0   : >> { %v269_v43 = vpop.permute.xlu0 %268 }
  0xa1   : >> { %v293_v44 = vsel %vm291_vm8, %v290_v42, %v269_v43 }
  0xa2   : >> { %v296_v45 = vsel %vm294_vm9, %v293_v44, %v272_v41 }
  0xa3   : >> { %519 = vmatmul.mubr.msk.bf16.vlgmr.msra.gmra.mxu0 %vm318_vm10, %v296_v45 }
 0x163   : >> { %v359_v46 = vpop.f32.mrf.mxu0 }
 0x164   : >> { %v360_v47 = vadd.f32 %v817_v5, %v359_v46 }
 0x165   : >> { %v520_v48 = vpop.f32.mrf.mxu0 }
 0x166   : >> { %v366_v50 = vmax.f32 %v360_v47, 0.0 }
 0x167   : >> { %v362_v49 = vpop.f32.mrf.mxu0 }
 0x168   : >> { %v363_v51 = vadd.f32 %v817_v5, %v362_v49  ;;  %v368_v54 = vsel %vm282_vm5, %v366_v50, 0.0 }
 0x169   : >> { %v521_v52 = vpop.f32.mrf.mxu0 }
 0x16a   : >> { %v367_v53 = vmax.f32 %v363_v51, 0.0 }
 0x16c   : >> { %v370_v55 = vsel %vm369_vm11, %v367_v53, 0.0 }
 0x16d   : >> { %v371_v56 = vadd.f32 %v370_v55, %v368_v54 }
 0x16f   : >> { %v372_v57 = vrot.slane %v371_v56, 4 }
 0x171   : >> { %v373_v58 = vadd.f32 %v372_v57, %v371_v56 }
 0x173   : >> { %v374_v59 = vrot.slane %v373_v58, 2 }
 0x175   : >> { %v375_v60 = vadd.f32 %v374_v59, %v373_v58 }
 0x177   : >> { %v376_v62 = vrot.slane %v375_v60, 1 }
 0x179   : >> { %v377_v63 = vadd.f32 %v376_v62, %v375_v60 }
 0x17a   : > { %194 = sbr.rel (!%p192_p0) target bundleno = 25 (0x19), region = 77 }
 0x17b   : >> { %v381_v7 = vsel %vm380_vm12, %v377_v63, 0.0 }
 0x17c   : >> { %v382_v8 = vadd.f32 %v694_v6, %v381_v7  }
 0x17e   : >> { %v912_v6 = vmov %v382_v8  ;;  %v383_v9 = vmul.f32 (%p192_p0), 0.0051020407, %v382_v8 }
 0x180   : > { %385 = vst.msk [vmem:[%s826_s28] sm:$0x1] %vm384_vm13, %v383_v9 }
 0x181   : > { %619 = shalt.err (!%p616_p9)
}
 0x182   : > { %s620_s15 = scalar_lea.hbm %s862_s5, 16  ;;  %s624_s10 = scalar_lea.hbm %s909_s3, 32 }
 0x183   : > { %p621_p10 = scmp.ne.s32.totalorder %s862_s5, %s620_s15  ;;  %p625_p13 = scmp.lt.s32.totalorder %s862_s5, %s909_s3 }
 0x184   : > { %p626_p0 = scmp.lt.s32.totalorder %s624_s10, %s620_s15 }
 0x185   : > { %p622_p11 = pnand %p621_p10, %p771_p4 }
 0x186   : > { %p627_p1 = por %p626_p0, %p625_p13 }
 0x187   : > { %p623_p12 = pneg %p622_p11 }
 0x189   : > { %p628_p2 = pnand %p627_p1, %p623_p12 }
 0x18b   : > { %631 = shalt.err (!%p628_p2)
}
 0x18c   : > { %522 = dma.vmem_to_hbm [thread:$0]  (%p771_p4), %s401_s6, 16, %s862_s5, %s387_s7  }
 0x18d PF: > { %p528_p3 = scmp.ge.s32.totalorder %s690_s17, 2  ;;  %s412_s19 = sand.u32 1, %s670_s12  }
 0x18e   : > { %s413_s21 = scalar_lea.sflag [#allocation3], %s412_s19 }
 0x18f   : > { %p525_p5 = pnand %p528_p3, %p778_p8 }
 0x191   : > { %p526_p6 = pneg %p525_p5 }
 0x193   : > { %665 = dma.done.wait (%p526_p6), %s413_s21, 16  }
 0x194   : > { %667 = vsyncadd (%p526_p6), %s413_s21, 4294967280  ;;  %s16_s17 = sadd.s32 1, %s690_s17   ;;  %s913_s12 = smov %s674_s13 }
 0x195   : > { %p13_p7 = scmp.ge.s32.totalorder %s16_s17, 4   ;;  %s914_s13 = smov %s678_s14 }
 0x196   : > { %s915_s14 = smov %s784_s25  ;;  %s916_s15 = smov %s686_s16 }
 0x197   : > { %s917_s16 = smov %s919_s20  ;;  %15 = sbr.rel (!%p13_p7) target bundleno = 4 (0x4), region = 88 }
 0x19c   :  { %417 = vsyncpa [#allocation3], 1 }
 0x19d   :  { %419 = vsyncpa [#allocation3 + $0x1], 1 }

</bundles_post_ra>
